<compile_context>
chip_gen: v5e
topology: v5e:2x2
jax: 0.10.0
libtpu: 0.0.40
codegen_flags: <defaults>
</compile_context>

<pallas_src>
import functools

import jax
import jax.numpy as jnp
from jax import lax
from jax.experimental import pallas as pl
from jax.experimental.pallas import tpu as pltpu


def pinn_forward_kernel(t_ref, w1_ref, b1_ref, w2_ref, b2_ref, w3_ref, b3_ref,
                        o_ref, *, chunk):
    """Batch-on-lanes layout: t/o tiles are (1, TN); activations (H, chunk)."""
    tn = t_ref.shape[1]
    num_chunks = tn // chunk

    # Weights are VMEM-resident; load (and thus broadcast) once, outside the
    # chunk loop.
    w1 = w1_ref[...]                     # (H, 1)  compute dtype
    b1 = b1_ref[...]                     # (H, 1)  compute dtype
    w2 = w2_ref[...]                     # (H, H)  compute dtype
    b2 = b2_ref[...]                     # (H, 1)  compute dtype
    w3 = w3_ref[...]                     # (H, 1)  f32
    b3 = b3_ref[0]                       # scalar  f32 (SMEM)
    cdt = w1.dtype

    def body(c, carry):
        start = pl.multiple_of(c * chunk, chunk)
        t_c = t_ref[:, pl.ds(start, chunk)].astype(cdt)          # (1, chunk)

        # Layer 1 (fan_in = 1): rank-1 broadcast multiply on the VPU, no MXU.
        h1 = jnp.tanh(w1 * t_c + b1)                             # (H, chunk)

        # Layer 2: the only real matmul, (H, H) @ (H, chunk), f32 accumulation.
        z2 = jnp.dot(w2, h1, preferred_element_type=jnp.float32)
        h2 = jnp.tanh(z2.astype(cdt) + b2)                       # (H, chunk)

        # Output layer (fan_out = 1): elementwise multiply + sublane reduce.
        out = jnp.sum(h2.astype(jnp.float32) * w3, axis=0,
                      keepdims=True)                             # (1, chunk)
        o_ref[:, pl.ds(start, chunk)] = (out + b3).astype(o_ref.dtype)
        return carry

    lax.fori_loop(0, num_chunks, body, 0, unroll=True)


def _default_compute_dtype():
    """bf16 tanh/matmul only where the VPU/EUP support it (v6e, v7x)."""
    try:
        kind = jax.devices()[0].device_kind.lower()
    except Exception:
        return jnp.float32
    if "v6" in kind or "v7" in kind:
        return jnp.bfloat16
    return jnp.float32


def pendulum_pinn_forward(t, params, *, tile_n=8192, compute_dtype=None):
    """t: (N, 1) float32 (PyTorch layout). Returns (N, 1) float32."""
    N = t.shape[0]
    H = params["w2"].shape[0]
    if compute_dtype is None:
        compute_dtype = _default_compute_dtype()

    def round_up(x, m):
        return ((x + m - 1) // m) * m

    # Lane-major batch tiling.
    #   N <= 2048          : one lane-aligned tile (launch-overhead regime).
    #   2048 < N <= tile_n : split into 2 tiles so v7x's 2nd TC gets work.
    #   N > tile_n         : tile_n-wide tiles (4*TN bytes/buffer, VMEM-cheap).
    if N <= 2048:
        TN = max(128, round_up(N, 128))
    elif N <= tile_n:
        TN = max(128, round_up(pl.cdiv(N, 2), 128))
    else:
        TN = tile_n
    num_tiles = pl.cdiv(N, TN)
    N_pad = num_tiles * TN

    # Inner vreg-resident chunk width (must divide TN; TN is a 128-multiple).
    chunk = 512 if TN % 512 == 0 else (256 if TN % 256 == 0 else 128)

    # Batch-on-lanes relayout; skip the pad pass when already aligned.
    t_row = t.reshape(1, N).astype(jnp.float32)
    if N_pad != N:
        t_row = jnp.pad(t_row, ((0, 0), (0, N_pad - N)))

    # Weights stay in PyTorch (out, in) convention; tanh-path operands in the
    # compute dtype, final-layer operands in f32.
    w1c = params["w1"].reshape(H, 1).astype(compute_dtype)
    b1c = params["b1"].reshape(H, 1).astype(compute_dtype)
    w2c = params["w2"].astype(compute_dtype)
    b2c = params["b2"].reshape(H, 1).astype(compute_dtype)
    w3c = params["w3"].reshape(H, 1).astype(jnp.float32)
    b3s = params["b3"].reshape(1).astype(jnp.float32)            # 1-D SMEM scalar

    # Full-array VMEM blocks with a constant block index -> weights stay
    # resident and are not re-DMA'd as the batch grid advances.
    resident = lambda a: pl.BlockSpec(a.shape, lambda i: (0,) * a.ndim)

    weight_bytes = 4 * (H + H + H * H + H + H + 1)
    cost = pl.CostEstimate(
        flops=int(2 * H * (H + 2) * N),
        transcendentals=int(2 * H * N),
        bytes_accessed=int(8 * N + weight_bytes),
    )

    out_row = pl.pallas_call(
        functools.partial(pinn_forward_kernel, chunk=chunk),
        out_shape=jax.ShapeDtypeStruct((1, N_pad), jnp.float32),
        grid=(num_tiles,),
        in_specs=[
            pl.BlockSpec((1, TN), lambda i: (0, i)),             # t tile (lanes)
            resident(w1c), resident(b1c),
            resident(w2c), resident(b2c),
            resident(w3c),
            pl.BlockSpec((1,), lambda i: (0,),
                         memory_space=pltpu.MemorySpace.SMEM),   # b3 scalar
        ],
        out_specs=pl.BlockSpec((1, TN), lambda i: (0, i)),
        compiler_params=pltpu.CompilerParams(
            dimension_semantics=("parallel",)),
        cost_estimate=cost,
    )(t_row, w1c, b1c, w2c, b2c, w3c, b3s)

    if N_pad != N:
        out_row = out_row[:, :N]
    return out_row.reshape(N, 1)


def init_params(key, hidden_dim=20):
    """PyTorch-Linear-style U(-1/sqrt(fan_in), 1/sqrt(fan_in)) init.

    Shapes follow the PyTorch convention: weight (out, in), bias (out,).
    """
    ks = jax.random.split(key, 6)

    def uni(k, shape, fan_in):
        bound = 1.0 / jnp.sqrt(jnp.float32(fan_in))
        return jax.random.uniform(k, shape, jnp.float32, -bound, bound)

    return {
        "w1": uni(ks[0], (hidden_dim, 1), 1),
        "b1": uni(ks[1], (hidden_dim,), 1),
        "w2": uni(ks[2], (hidden_dim, hidden_dim), hidden_dim),
        "b2": uni(ks[3], (hidden_dim,), hidden_dim),
        "w3": uni(ks[4], (1, hidden_dim), hidden_dim),
        "b3": uni(ks[5], (1,), hidden_dim),
    }


def reference_forward(t, p):
    """Pure-JAX reference with PyTorch semantics: x @ W.T + b per layer."""
    h1 = jnp.tanh(t @ p["w1"].T + p["b1"])
    h2 = jnp.tanh(h1 @ p["w2"].T + p["b2"])
    return h2 @ p["w3"].T + p["b3"]


if __name__ == "__main__":
    key = jax.random.PRNGKey(0)
    kp, kt = jax.random.split(key)

    hidden_dim = 20
    params = init_params(kp, hidden_dim=hidden_dim)

    # Batches of time points, shape (N, 1) like the PyTorch module:
    #   8 = smoke test, 200 = n_phys_points, 2500 exercises the multi-tile path.
    for N in (8, 200, 2500):
        t = jax.random.uniform(jax.random.fold_in(kt, N), (N, 1),
                               jnp.float32, 0.0, 2.0)
        ref = reference_forward(t, params)

        # Tight check on the all-f32 path (catches layout/transpose bugs).
        out_f32 = jax.block_until_ready(
            pendulum_pinn_forward(t, params, compute_dtype=jnp.float32))
        assert out_f32.shape == (N, 1)
        assert jnp.allclose(out_f32, ref, atol=1e-4, rtol=1e-4), \
            float(jnp.max(jnp.abs(out_f32 - ref)))

        # Device-default path (bf16 tanh/matmul on v6e/v7x, f32 elsewhere);
        # loose tolerance only because of the possible bf16 activations.
        out_auto = jax.block_until_ready(pendulum_pinn_forward(t, params))
        assert out_auto.shape == (N, 1)
        assert jnp.allclose(out_auto, ref, atol=5e-2, rtol=5e-2), \
            float(jnp.max(jnp.abs(out_auto - ref)))

    # TODO(synk): physics_loss/data_loss/train_model (autograd training loop)
    # and the file/plotting helpers are host-side / jax.grad territory, not part
    # of the forward kernel.
    print("KERNEL_OK")
</pallas_src>

<mosaic_0001>
module attributes {stable_mosaic.version = 11 : i64} {
  func.func @pinn_forward_kernel(%arg0: i32, %arg1: memref<1x128xf32, #tpu.memory_space<vmem>>, %arg2: memref<20x1xf32, #tpu.memory_space<vmem>>, %arg3: memref<20x1xf32, #tpu.memory_space<vmem>>, %arg4: memref<20x20xf32, #tpu.memory_space<vmem>>, %arg5: memref<20x1xf32, #tpu.memory_space<vmem>>, %arg6: memref<20x1xf32, #tpu.memory_space<vmem>>, %arg7: memref<1xf32, #tpu.memory_space<smem>>, %arg8: memref<1x128xf32, #tpu.memory_space<vmem>>) attributes {dimension_semantics = [#tpu.dimension_semantics<parallel>], iteration_bounds = array<i64: 1>, scalar_prefetch = 0 : i64, scratch_operands = 0 : i64, tpu.core_type = #tpu.core_type<tc>, window_params = [{transform_indices = @transform_0, window_bounds = array<i64: 1, 128>}, {pipeline_mode = #tpu.pipeline_mode<synchronous>, transform_indices = @transform_1, window_bounds = array<i64: 20, 1>}, {pipeline_mode = #tpu.pipeline_mode<synchronous>, transform_indices = @transform_2, window_bounds = array<i64: 20, 1>}, {pipeline_mode = #tpu.pipeline_mode<synchronous>, transform_indices = @transform_3, window_bounds = array<i64: 20, 20>}, {pipeline_mode = #tpu.pipeline_mode<synchronous>, transform_indices = @transform_4, window_bounds = array<i64: 20, 1>}, {pipeline_mode = #tpu.pipeline_mode<synchronous>, transform_indices = @transform_5, window_bounds = array<i64: 20, 1>}, {transform_indices = @transform_6, window_bounds = array<i64: 1>}, {transform_indices = @transform_7, window_bounds = array<i64: 1, 128>}]} {
    %c0 = arith.constant 0 : index
    %c0_0 = arith.constant 0 : index
    %0 = vector.load %arg2[%c0, %c0_0] : memref<20x1xf32, #tpu.memory_space<vmem>>, vector<20x1xf32>
    %c0_1 = arith.constant 0 : index
    %c0_2 = arith.constant 0 : index
    %1 = vector.load %arg3[%c0_1, %c0_2] : memref<20x1xf32, #tpu.memory_space<vmem>>, vector<20x1xf32>
    %c0_3 = arith.constant 0 : index
    %c0_4 = arith.constant 0 : index
    %2 = vector.load %arg4[%c0_3, %c0_4] : memref<20x20xf32, #tpu.memory_space<vmem>>, vector<20x20xf32>
    %c0_5 = arith.constant 0 : index
    %c0_6 = arith.constant 0 : index
    %3 = vector.load %arg5[%c0_5, %c0_6] : memref<20x1xf32, #tpu.memory_space<vmem>>, vector<20x1xf32>
    %c0_7 = arith.constant 0 : index
    %c0_8 = arith.constant 0 : index
    %4 = vector.load %arg6[%c0_7, %c0_8] : memref<20x1xf32, #tpu.memory_space<vmem>>, vector<20x1xf32>
    %c0_9 = arith.constant 0 : index
    %5 = memref.load %arg7[%c0_9] : memref<1xf32, #tpu.memory_space<smem>>
    %c0_i32 = arith.constant 0 : i32
    %c128_i32 = arith.constant 128 : i32
    %6 = arith.muli %c0_i32, %c128_i32 : i32
    %7 = tpu.assume_multiple %6, 128 : i32
    %c0_10 = arith.constant 0 : index
    %8 = arith.index_cast %7 : i32 to index
    %9 = vector.load %arg1[%c0_10, %8] : memref<1x128xf32, #tpu.memory_space<vmem>>, vector<1x128xf32>
    %10 = vector.broadcast %0 : vector<20x1xf32> to vector<20x128xf32>
    %11 = vector.broadcast %9 : vector<1x128xf32> to vector<20x128xf32>
    %12 = arith.mulf %10, %11 : vector<20x128xf32>
    %13 = vector.broadcast %1 : vector<20x1xf32> to vector<20x128xf32>
    %14 = arith.addf %12, %13 : vector<20x128xf32>
    %15 = math.tanh %14 : vector<20x128xf32>
    %cst = arith.constant dense<0.000000e+00> : vector<20x128xf32>
    %16 = tpu.matmul %2, %15, %cst {dimension_numbers = #tpu.dot_dimension_numbers<[1], [0], [0], [1], [0, 0, 1, 1], [], []>} : vector<20x20xf32>, vector<20x128xf32>, vector<20x128xf32> -> vector<20x128xf32>
    %17 = vector.broadcast %3 : vector<20x1xf32> to vector<20x128xf32>
    %18 = arith.addf %16, %17 : vector<20x128xf32>
    %19 = math.tanh %18 : vector<20x128xf32>
    %20 = vector.broadcast %4 : vector<20x1xf32> to vector<20x128xf32>
    %21 = arith.mulf %19, %20 : vector<20x128xf32>
    %cst_11 = arith.constant dense<0.000000e+00> : vector<128xf32>
    %22 = vector.multi_reduction <add>, %21, %cst_11 [0] : vector<20x128xf32> to vector<128xf32>
    %23 = vector.shape_cast %22 : vector<128xf32> to vector<1x128xf32>
    %24 = vector.broadcast %5 : f32 to vector<1x128xf32>
    %25 = arith.addf %23, %24 : vector<1x128xf32>
    %c0_12 = arith.constant 0 : index
    %26 = arith.index_cast %7 : i32 to index
    %27 = vector.load %arg8[%c0_12, %26] : memref<1x128xf32, #tpu.memory_space<vmem>>, vector<1x128xf32>
    tpu.vector_store %arg8[%c0_12, %26], %25 {strides = array<i32>} : memref<1x128xf32, #tpu.memory_space<vmem>>, vector<1x128xf32>,
    %c1_i32 = arith.constant 1 : i32
    return
  }
  func.func @transform_0(%arg0: i32) -> (i32, i32) {
    %c0_i32 = arith.constant 0 : i32
    %c0_i32_0 = arith.constant 0 : i32
    return %c0_i32, %arg0 : i32, i32
  }
  func.func @transform_1(%arg0: i32) -> (i32, i32) {
    %c0_i32 = arith.constant 0 : i32
    %c0_i32_0 = arith.constant 0 : i32
    %c0_i32_1 = arith.constant 0 : i32
    return %c0_i32, %c0_i32_0 : i32, i32
  }
  func.func @transform_2(%arg0: i32) -> (i32, i32) {
    %c0_i32 = arith.constant 0 : i32
    %c0_i32_0 = arith.constant 0 : i32
    %c0_i32_1 = arith.constant 0 : i32
    return %c0_i32, %c0_i32_0 : i32, i32
  }
  func.func @transform_3(%arg0: i32) -> (i32, i32) {
    %c0_i32 = arith.constant 0 : i32
    %c0_i32_0 = arith.constant 0 : i32
    %c0_i32_1 = arith.constant 0 : i32
    return %c0_i32, %c0_i32_0 : i32, i32
  }
  func.func @transform_4(%arg0: i32) -> (i32, i32) {
    %c0_i32 = arith.constant 0 : i32
    %c0_i32_0 = arith.constant 0 : i32
    %c0_i32_1 = arith.constant 0 : i32
    return %c0_i32, %c0_i32_0 : i32, i32
  }
  func.func @transform_5(%arg0: i32) -> (i32, i32) {
    %c0_i32 = arith.constant 0 : i32
    %c0_i32_0 = arith.constant 0 : i32
    %c0_i32_1 = arith.constant 0 : i32
    return %c0_i32, %c0_i32_0 : i32, i32
  }
  func.func @transform_6(%arg0: i32) -> i32 {
    %c0_i32 = arith.constant 0 : i32
    %c0_i32_0 = arith.constant 0 : i32
    return %c0_i32 : i32
  }
  func.func @transform_7(%arg0: i32) -> (i32, i32) {
    %c0_i32 = arith.constant 0 : i32
    %c0_i32_0 = arith.constant 0 : i32
    return %c0_i32, %arg0 : i32, i32
  }
}

</mosaic_0001>

<bundles_post_ra>
// kernel: tpu_custom_call.1
= control target key start
LH: loop header
LB: loop body
LE: loop exit
PB: predicated region body
PF: predicated region fallthrough
CT: control target
= control target key end

     0   :  { %v245_v2 = vmov 0   ;;  %s345_s0 = inlined_call_operand.vmem [shape: f32[1,128], index: 0, kind: input, shape index: {}]   ;;  %s346_s1 = inlined_call_operand.vmem [shape: f32[20,1], index: 1, kind: input, shape index: {}]   ;;  %s347_s2 = inlined_call_operand.vmem [shape: f32[20,1], index: 2, kind: input, shape index: {}]   ;;  %s348_s3 = inlined_call_operand.vmem [shape: f32[20,20], index: 3, kind: input, shape index: {}]   ;;  %s349_s4 = inlined_call_operand.vmem [shape: f32[20,1], index: 4, kind: input, shape index: {}]   ;;  %s350_s5 = inlined_call_operand.vmem [shape: f32[20,1], index: 5, kind: input, shape index: {}]   ;;  %s351_s6 = inlined_call_operand.<no memory space> [shape: f32[1], index: 6, kind: input, shape index: {}]   ;;  %s352_s7 = inlined_call_operand.hbm [shape: f32[1,128], index: 7, kind: output, shape index: {}]  }
   0x1   :  { %v33_v0 = vld [vmem:[%s347_s2 + $0x10] sm:$0xf]  ;;  %204 = vset.pattern.permute.xlu1 %v245_v2  ;;  %203 = vset.pattern.permute.xlu0 %v245_v2  ;;  %v32_v3 = vld [vmem:[%s347_s2 + $0x8] sm:$0xff] }
   0x2   :  { %v30_v1 = vld [vmem:[%s346_s1 + $0x10] sm:$0xf]  ;;  %78 = vperm.xlu1 %204, %v33_v0   ;;  %205 = vset.pattern.permute.xlu2 %v245_v2 }
   0x3   :  { %57 = vperm.xlu0 %203, %v30_v1   ;;  %73 = vperm.xlu2 %205, %v32_v3  }
   0x4   :  { %13 = vsyncpa [#allocation4], 0  ;;  %v29_v4 = vld [vmem:[%s346_s1 + $0x8] sm:$0xff]  ;;  %v28_v5 = vld [vmem:[%s346_s1] sm:$0xff]  ;;  %vm112_vm0 = vcmask 1043456   ;;  %vm102_vm1 = vcmask 162816   ;;  %v172_v58 = vstv %s351_s6 }
   0x5   :  { %v31_v6 = vld [vmem:[%s347_s2] sm:$0xff]  ;;  %v38_v8 = vld [vmem:[%s349_s4 + $0x8] sm:$0xff]  ;;  %v39_v9 = vld [vmem:[%s349_s4 + $0x10] sm:$0xf]  ;;  %s246_s29 = smov [#allocation3]   ;;  %s182_s10 = sshll.u32 %s352_s7, 4  ;;  %s183_s10 = int_to_ptr.hbm [resolvable:$true] %s182_s10 }
   0x6   :  { %v37_v7 = vld [vmem:[%s349_s4] sm:$0xff]  ;;  %v41_v11 = vld [vmem:[%s350_s5 + $0x8] sm:$0xff]  ;;  %v42_v12 = vld [vmem:[%s350_s5 + $0x10] sm:$0xf]  ;;  %s180_s30 = sshll.u32 %s246_s29, 4  ;;  %s181_s30 = int_to_ptr.vmem [resolvable:$true] %s180_s30 }
   0x7   :  { %v40_v10 = vld [vmem:[%s350_s5] sm:$0xff]  ;;  %v35_v30 = vld [vmem:[%s348_s3 + $0x8] sm:$0xff]  ;;  %v36_v31 = vld [vmem:[%s348_s3 + $0x10] sm:$0xf] }
   0x8   :  { %v206_v13 = vld [vmem:[%s345_s0] ss:$0 sm:$0xff] }
   0x9   :  { %v34_v28 = vld [vmem:[%s348_s3] sm:$0xff] }
   0xa   :  { %47 = vperm.xlu1 %204, %v28_v5  }
   0xb   :  { %52 = vperm.xlu0 %203, %v29_v4   ;;  %68 = vperm.xlu2 %205, %v31_v6  }
  0x12   :  { %94 = vperm.xlu1 %204, %v38_v8  }
  0x13   :  { %89 = vperm.xlu0 %203, %v37_v7   ;;  %99 = vperm.xlu2 %205, %v39_v9  }
  0x1a   :  { %152 = vperm.xlu1 %204, %v41_v11  }
  0x1b   :  { %147 = vperm.xlu0 %203, %v40_v10   ;;  %157 = vperm.xlu2 %205, %v42_v12  }
  0x5d   :  { %v74_v14 = vpop.permute.xlu2 %73 }
  0x65   :  { %v69_v23 = vpop.permute.xlu2 %68 }
  0x6d   :  { %v100_v38 = vpop.permute.xlu2 %99 }
  0x74   :  { %v79_v15 = vpop.permute.xlu1 %78 }
  0x75   :  { %v58_v16 = vpop.permute.xlu0 %57  ;;  %v158_v48 = vpop.permute.xlu2 %157 }
  0x76   :  { %v65_v17 = vmul.f32 %v206_v13, %v58_v16 }
  0x78   :  { %v83_v18 = vadd.f32 %v79_v15, %v65_v17 }
  0x7a   :  { %207 = vtanh.f32 %v83_v18 }
  0x7c   :  { %v48_v20 = vpop.permute.xlu1 %47 }
  0x7d   :  { %v53_v19 = vpop.permute.xlu0 %52  ;;  %v63_v22 = vmul.f32 %v206_v13, %v48_v20 }
  0x7e   :  { %v64_v21 = vmul.f32 %v206_v13, %v53_v19 }
  0x7f   :  { %v81_v26 = vadd.f32 %v69_v23, %v63_v22 }
  0x80   :  { %v208_v24 = vpop.eup %207  ;;  %v82_v25 = vadd.f32 %v74_v14, %v64_v21 }
  0x81   :  { %191 = vmatpush.msk.msra.mxu0 %vm112_vm0, %v208_v24  ;;  %195 = vmatpush.msk.msra.mxu1 %vm112_vm0, %v208_v24 }
  0x82   :  { %209 = vtanh.f32 %v82_v25  ;;  %196 = vmatpush.msk.msra.mxu2 %vm112_vm0, %v208_v24 }
  0x83   :  { %211 = vtanh.f32 %v81_v26 }
  0x84   :  { %v95_v34 = vpop.permute.xlu1 %94 }
  0x85   :  { %v90_v32 = vpop.permute.xlu0 %89 }
  0x88   :  { %v210_v27 = vpop.eup %209 }
  0x89   :  { %130 = vmatpush.msra.mxu0 %v210_v27  ;;  %197 = vmatpush.msra.mxu1 %v210_v27  ;;  %v212_v29 = vpop.eup %211 }
  0x8a   :  { %198 = vmatpush.msra.mxu2 %v210_v27 }
  0x8b   :  { %131 = vmatpush.msra.mxu0 %v212_v29  ;;  %199 = vmatpush.msra.mxu1 %v212_v29 }
  0x8c   :  { %200 = vmatpush.msra.mxu2 %v212_v29  ;;  %192 = vmatmul.msk.f32.vlgmr.msra.gmra.mxu0 %vm102_vm1, %v34_v28  ;;  %v153_v44 = vpop.permute.xlu1 %152 }
  0x8d   :  { %193 = vmatmul.msk.f32.vlgmr.msra.gmra.mxu1 %vm102_vm1, %v35_v30  ;;  %194 = vmatmul.msk.f32.vlgmr.msra.gmra.mxu2 %vm102_vm1, %v36_v31  ;;  %v148_v43 = vpop.permute.xlu0 %147 }
 0x109   :  { %v133_v33 = vpop.f32.mrf.mxu0 }
 0x10a   :  { %v134_v35 = vadd.f32 %v133_v33, %v90_v32  ;;  %v136_v36 = vpop.f32.mrf.mxu1 }
 0x10b   :  { %v137_v37 = vadd.f32 %v136_v36, %v95_v34 }
 0x10c   :  { %213 = vtanh.f32 %v134_v35 }
 0x10d   :  { %215 = vtanh.f32 %v137_v37 }
 0x110   :  { %v139_v39 = vpop.f32.mrf.mxu2 }
 0x111   :  { %v140_v40 = vadd.f32 %v139_v39, %v100_v38 }
 0x112   :  { %v214_v41 = vpop.eup %213 }
 0x113   :  { %217 = vtanh.f32 %v140_v40  ;;  %v216_v42 = vpop.eup %215  ;;  %v160_v45 = vmul.f32 %v214_v41, %v148_v43 }
 0x114   :  { %v161_v46 = vmul.f32 %v216_v42, %v153_v44 }
 0x116   :  { %v163_v50 = vadd.f32 %v161_v46, %v160_v45 }
 0x119   :  { %v218_v47 = vpop.eup %217 }
 0x11a   :  { %v162_v49 = vmul.f32 %v218_v47, %v158_v48 }
 0x11c   :  { %v164_v51 = vsel %vm112_vm0, %v162_v49, 0.0 }
 0x11d   :  { %v165_v52 = vadd.f32 %v164_v51, %v163_v50 }
 0x11f   :  { %v166_v53 = vrot.slane %v165_v52, 4 }
 0x121   :  { %v167_v54 = vadd.f32 %v166_v53, %v165_v52 }
 0x123   :  { %v168_v55 = vrot.slane %v167_v54, 2 }
 0x125   :  { %v169_v56 = vadd.f32 %v168_v55, %v167_v54 }
 0x127   :  { %v170_v57 = vrot.slane %v169_v56, 1 }
 0x129   :  { %v171_v59 = vadd.f32 %v170_v57, %v169_v56 }
 0x12b   :  { %v173_v60 = vadd.f32 %v172_v58, %v171_v59 }
 0x12d   :  { %174 = vst [vmem:[#allocation3] sm:$0x1] %v173_v60 }
 0x12e   :  { %185 = dma.vmem_to_hbm [thread:$0]  %s181_s30, 16, %s183_s10, [#allocation4]  }
 0x12f   :  { %243 = dma.done.wait [#allocation4], 16  }
 0x130   :  { %244 = vsyncadd [#allocation4], 4294967280 }
 0x131   :  { %190 = vsyncpa [#allocation4], 1 }

</bundles_post_ra>
